<compile_context>
chip_gen: v7x
topology: tpu7x:2x2x1
jax: 0.10.0
libtpu: 0.0.40
codegen_flags: <defaults>
</compile_context>

<pallas_src>
import jax
import jax.numpy as jnp
from jax.experimental import pallas as pl
from jax.experimental.pallas import tpu as pltpu


def _round_up(a, m):
    return ((a + m - 1) // m) * m


def _round_down(a, m):
    return (a // m) * m


def channel_mask(x, params, *, tl_max=8192, vmem_budget_bytes=24 * 1024 * 1024):
    """x: (B, C, L) -> (B, C, 1), matching ChannelMask.forward."""
    B, C, L = x.shape

    # 1x1 Conv1d == linear over channels. Pre-transpose so the kernel does
    # v @ W1T and h @ W2T with no in-kernel transposes.
    w1 = params["fc1_weight"][:, :, 0]                     # (S, C)
    b1 = params["fc1_bias"]                                # (S,)
    w2 = params["fc2_weight"][:, :, 0]                     # (C, S)
    b2 = params["fc2_bias"]                                # (C,)
    S = w1.shape[0]
    w1t = w1.T.astype(jnp.float32)                         # (C, S)
    w2t = w2.T.astype(jnp.float32)                         # (S, C)
    b1r = b1.reshape(1, S).astype(jnp.float32)
    b2r = b2.reshape(1, C).astype(jnp.float32)

    itemsize = jnp.dtype(x.dtype).itemsize

    # Batch tile: full batch if small, else 8 (sublane-aligned output blocks).
    TB = B if B <= 8 else 8
    B_pad = _round_up(B, TB)

    # Lane tile: biggest multiple of 128 that keeps the double-buffered input
    # inside the VMEM budget (works for v5e's 16 MiB default scoped VMEM and
    # v7x's 64 MiB physical VMEM), capped by tl_max and the padded L extent.
    tl_budget = max(128, vmem_budget_bytes // (2 * TB * C * itemsize))
    tl_cap = _round_down(tl_budget, 128)
    TL = max(128, min(_round_up(L, 128), tl_cap, _round_up(tl_max, 128)))
    L_pad = _round_up(L, TL)

    needs_mask = L_pad != L
    if (B_pad != B) or (L_pad != L):
        x = jnp.pad(x, ((0, B_pad - B), (0, 0), (0, L_pad - L)))

    n_b = B_pad // TB
    n_l = L_pad // TL
    inv_L = 1.0 / float(L)

    def kernel(x_ref, w1t_ref, b1_ref, w2t_ref, b2_ref, o_ref, sum_acc, max_acc):
        li = pl.program_id(1)

        @pl.when(li == 0)
        def _init():
            sum_acc[...] = jnp.zeros_like(sum_acc)
            max_acc[...] = jnp.full_like(max_acc, -jnp.inf)

        xf = x_ref[...].astype(jnp.float32)                # (TB, C, TL)
        # Zero padding (batch & length) is exact for the sum; only the max
        # needs the padded tail lanes masked out.
        if needs_mask:
            lane = jax.lax.broadcasted_iota(jnp.int32, (1, 1, TL), 2)
            valid = (li * TL + lane) < L
            xm = jnp.where(valid, xf, -jnp.inf)
        else:
            xm = xf

        sum_acc[...] = sum_acc[...] + jnp.sum(xf, axis=-1)                 # (TB, C)
        max_acc[...] = jnp.maximum(max_acc[...], jnp.max(xm, axis=-1))     # (TB, C)

        @pl.when(li == pl.num_programs(1) - 1)
        def _finalize():
            avg = sum_acc[...] * inv_L                     # (TB, C)
            mx = max_acc[...]                              # (TB, C)
            w1v = w1t_ref[...]                             # (C, S)
            b1v = b1_ref[...]                              # (1, S)
            w2v = w2t_ref[...]                             # (S, C)
            b2v = b2_ref[...]                              # (1, C)

            def mlp(v):
                h = jnp.dot(v, w1v, preferred_element_type=jnp.float32) + b1v
                h = jnp.maximum(h, 0.0)
                return jnp.dot(h, w2v, preferred_element_type=jnp.float32) + b2v

            o_ref[...] = jax.nn.sigmoid(mlp(avg) + mlp(mx)).astype(o_ref.dtype)

    # Actual VMEM need (double-buffered input + scratch + params + output) with
    # headroom, capped well under v7x's 64 MiB physical VMEM.
    vmem_need = (2 * TB * C * TL) * itemsize \
        + (4 * TB * C + 2 * (2 * C * S + S + C)) * 4 + (1 << 20)
    vmem_limit = int(min(max(vmem_need, 8 << 20), 48 << 20))

    out = pl.pallas_call(
        kernel,
        out_shape=jax.ShapeDtypeStruct((B_pad, C), x.dtype),
        grid_spec=pltpu.PrefetchScalarGridSpec(
            num_scalar_prefetch=0,
            grid=(n_b, n_l),
            in_specs=[
                pl.BlockSpec((TB, C, TL), lambda bi, li: (bi, 0, li)),
                pl.BlockSpec((C, S), lambda bi, li: (0, 0)),
                pl.BlockSpec((1, S), lambda bi, li: (0, 0)),
                pl.BlockSpec((S, C), lambda bi, li: (0, 0)),
                pl.BlockSpec((1, C), lambda bi, li: (0, 0)),
            ],
            out_specs=pl.BlockSpec((TB, C), lambda bi, li: (bi, 0)),
            scratch_shapes=[
                pltpu.VMEM((TB, C), jnp.float32),   # running sum over L
                pltpu.VMEM((TB, C), jnp.float32),   # running max over L
            ],
        ),
        compiler_params=pltpu.CompilerParams(
            dimension_semantics=("parallel", "arbitrary"),
            vmem_limit_bytes=vmem_limit,
        ),
        cost_estimate=pl.CostEstimate(
            flops=2 * B * C * L + 8 * B * C * S,
            transcendentals=B * C,
            bytes_accessed=B * C * L * itemsize + B * C * itemsize
            + (2 * C * S + S + C) * 4,
        ),
    )(x, w1t, b1r, w2t, b2r)

    return out[:B][:, :, None]                              # (B, C, 1)


def channel_mask_ref(x, params):
    """Plain-JAX reference matching the PyTorch forward."""
    w1 = params["fc1_weight"][:, :, 0]
    b1 = params["fc1_bias"]
    w2 = params["fc2_weight"][:, :, 0]
    b2 = params["fc2_bias"]
    avg = jnp.mean(x, axis=-1)
    mx = jnp.max(x, axis=-1)

    def mlp(v):
        return jnp.maximum(v @ w1.T + b1, 0.0) @ w2.T + b2

    return jax.nn.sigmoid(mlp(avg) + mlp(mx))[:, :, None]


def init_params(key, input_channels=16, ratio=8):
    """Deterministic params mirroring the module's Conv1d shapes."""
    S = int(input_channels / ratio)
    k1, k2, k3, k4 = jax.random.split(key, 4)
    return {
        "fc1_weight": jax.random.normal(k1, (S, input_channels, 1), jnp.float32) * 0.1,
        "fc1_bias": jax.random.normal(k2, (S,), jnp.float32) * 0.1,
        "fc2_weight": jax.random.normal(k3, (input_channels, S, 1), jnp.float32) * 0.1,
        "fc2_bias": jax.random.normal(k4, (input_channels,), jnp.float32) * 0.1,
    }


if __name__ == "__main__":
    key = jax.random.PRNGKey(0)
    k_x, k_p = jax.random.split(key)

    # Small shapes consistent with the module: ratio=8 needs channels >= 8.
    B, C, L = 2, 16, 300
    x = jax.random.normal(k_x, (B, C, L), dtype=jnp.float32)
    params = init_params(k_p, input_channels=C, ratio=8)

    ref = channel_mask_ref(x, params)

    # Default tiling (single L tile here, masked tail since 300 % 128 != 0).
    out = jax.block_until_ready(channel_mask(x, params))
    assert out.shape == (B, C, 1)
    assert bool(jnp.allclose(out, ref, atol=1e-5, rtol=1e-5))

    # Force multiple L tiles to exercise the multi-step reduction + mask path.
    out2 = jax.block_until_ready(channel_mask(x, params, tl_max=128))
    assert bool(jnp.allclose(out2, ref, atol=1e-5, rtol=1e-5))

    print("KERNEL_OK")
</pallas_src>

<mosaic_0001>
module attributes {stable_mosaic.version = 11 : i64} {
  func.func @kernel(%arg0: i32, %arg1: i32, %arg2: memref<2x16x384xf32, #tpu.memory_space<vmem>>, %arg3: memref<16x2xf32, #tpu.memory_space<vmem>>, %arg4: memref<1x2xf32, #tpu.memory_space<vmem>>, %arg5: memref<2x16xf32, #tpu.memory_space<vmem>>, %arg6: memref<1x16xf32, #tpu.memory_space<vmem>>, %arg7: memref<2x16xf32, #tpu.memory_space<vmem>>, %arg8: memref<2x16xf32, #tpu.memory_space<vmem>>, %arg9: memref<2x16xf32, #tpu.memory_space<vmem>>) attributes {dimension_semantics = [#tpu.dimension_semantics<parallel>, #tpu.dimension_semantics<arbitrary>], iteration_bounds = array<i64: 1, 1>, scalar_prefetch = 0 : i64, scratch_operands = 2 : i64, tpu.core_type = #tpu.core_type<tc>, window_params = [{transform_indices = @transform_0, window_bounds = array<i64: 2, 16, 384>}, {pipeline_mode = #tpu.pipeline_mode<synchronous>, transform_indices = @transform_1, window_bounds = array<i64: 16, 2>}, {pipeline_mode = #tpu.pipeline_mode<synchronous>, transform_indices = @transform_2, window_bounds = array<i64: 1, 2>}, {pipeline_mode = #tpu.pipeline_mode<synchronous>, transform_indices = @transform_3, window_bounds = array<i64: 2, 16>}, {pipeline_mode = #tpu.pipeline_mode<synchronous>, transform_indices = @transform_4, window_bounds = array<i64: 1, 16>}, {transform_indices = @transform_5, window_bounds = array<i64: 2, 16>}]} {
    %c0_i32 = arith.constant 0 : i32
    %0 = arith.cmpi eq, %arg1, %c0_i32 : i32
    %1 = arith.extui %0 : i1 to i32
    %c0_i32_0 = arith.constant 0 : i32
    %2 = arith.cmpi ne, %1, %c0_i32_0 : i32
    scf.if %2 {
      %cst_15 = arith.constant 0.000000e+00 : f32
      %25 = vector.broadcast %cst_15 : f32 to vector<2x16xf32>
      %c0_16 = arith.constant 0 : index
      %c0_17 = arith.constant 0 : index
      %26 = vector.load %arg8[%c0_16, %c0_17] : memref<2x16xf32, #tpu.memory_space<vmem>>, vector<2x16xf32>
      tpu.vector_store %arg8[%c0_16, %c0_17], %25 {strides = array<i32>} : memref<2x16xf32, #tpu.memory_space<vmem>>, vector<2x16xf32>,
      %cst_18 = arith.constant 0xFF800000 : f32
      %27 = vector.broadcast %cst_18 : f32 to vector<2x16xf32>
      %c0_19 = arith.constant 0 : index
      %c0_20 = arith.constant 0 : index
      %28 = vector.load %arg9[%c0_19, %c0_20] : memref<2x16xf32, #tpu.memory_space<vmem>>, vector<2x16xf32>
      tpu.vector_store %arg9[%c0_19, %c0_20], %27 {strides = array<i32>} : memref<2x16xf32, #tpu.memory_space<vmem>>, vector<2x16xf32>,
    } else {
    }
    %c0 = arith.constant 0 : index
    %c0_1 = arith.constant 0 : index
    %c0_2 = arith.constant 0 : index
    %3 = vector.load %arg2[%c0, %c0_1, %c0_2] : memref<2x16x384xf32, #tpu.memory_space<vmem>>, vector<2x16x384xf32>
    %4 = tpu.iota {dimensions = array<i32: 2>} : vector<1x1x384xi32>
    %c384_i32 = arith.constant 384 : i32
    %5 = arith.muli %arg1, %c384_i32 : i32
    %6 = vector.broadcast %5 : i32 to vector<1x1x384xi32>
    %7 = arith.addi %6, %4 : vector<1x1x384xi32>
    %c300_i32 = arith.constant 300 : i32
    %8 = vector.broadcast %c300_i32 : i32 to vector<1x1x384xi32>
    %9 = arith.cmpi slt, %7, %8 : vector<1x1x384xi32>
    %cst = arith.constant 0xFF800000 : f32
    %10 = vector.shape_cast %9 : vector<1x1x384xi1> to vector<1x1x384xi1>
    %11 = vector.broadcast %10 : vector<1x1x384xi1> to vector<2x16x384xi1>
    %12 = vector.broadcast %cst : f32 to vector<2x16x384xf32>
    %13 = arith.select %11, %3, %12 : vector<2x16x384xi1>, vector<2x16x384xf32>
    %c0_3 = arith.constant 0 : index
    %c0_4 = arith.constant 0 : index
    %14 = vector.load %arg8[%c0_3, %c0_4] : memref<2x16xf32, #tpu.memory_space<vmem>>, vector<2x16xf32>
    %cst_5 = arith.constant dense<0.000000e+00> : vector<2x16xf32>
    %15 = vector.multi_reduction <add>, %3, %cst_5 [2] : vector<2x16x384xf32> to vector<2x16xf32>
    %16 = arith.addf %14, %15 : vector<2x16xf32>
    %c0_6 = arith.constant 0 : index
    %c0_7 = arith.constant 0 : index
    %17 = vector.load %arg8[%c0_6, %c0_7] : memref<2x16xf32, #tpu.memory_space<vmem>>, vector<2x16xf32>
    tpu.vector_store %arg8[%c0_6, %c0_7], %16 {strides = array<i32>} : memref<2x16xf32, #tpu.memory_space<vmem>>, vector<2x16xf32>,
    %c0_8 = arith.constant 0 : index
    %c0_9 = arith.constant 0 : index
    %18 = vector.load %arg9[%c0_8, %c0_9] : memref<2x16xf32, #tpu.memory_space<vmem>>, vector<2x16xf32>
    %cst_10 = arith.constant dense<0xFF800000> : vector<2x16xf32>
    %19 = vector.multi_reduction <maximumf>, %13, %cst_10 [2] : vector<2x16x384xf32> to vector<2x16xf32>
    %20 = arith.maximumf %18, %19 : vector<2x16xf32>
    %c0_11 = arith.constant 0 : index
    %c0_12 = arith.constant 0 : index
    %21 = vector.load %arg9[%c0_11, %c0_12] : memref<2x16xf32, #tpu.memory_space<vmem>>, vector<2x16xf32>
    tpu.vector_store %arg9[%c0_11, %c0_12], %20 {strides = array<i32>} : memref<2x16xf32, #tpu.memory_space<vmem>>, vector<2x16xf32>,
    %c0_i32_13 = arith.constant 0 : i32
    %22 = arith.cmpi eq, %arg1, %c0_i32_13 : i32
    %23 = arith.extui %22 : i1 to i32
    %c0_i32_14 = arith.constant 0 : i32
    %24 = arith.cmpi ne, %23, %c0_i32_14 : i32
    scf.if %24 {
      %c0_15 = arith.constant 0 : index
      %c0_16 = arith.constant 0 : index
      %25 = vector.load %arg8[%c0_15, %c0_16] : memref<2x16xf32, #tpu.memory_space<vmem>>, vector<2x16xf32>
      %cst_17 = arith.constant 0.00333333341 : f32
      %26 = vector.broadcast %cst_17 : f32 to vector<2x16xf32>
      %27 = arith.mulf %25, %26 : vector<2x16xf32>
      %c0_18 = arith.constant 0 : index
      %c0_19 = arith.constant 0 : index
      %28 = vector.load %arg9[%c0_18, %c0_19] : memref<2x16xf32, #tpu.memory_space<vmem>>, vector<2x16xf32>
      %c0_20 = arith.constant 0 : index
      %c0_21 = arith.constant 0 : index
      %29 = vector.load %arg3[%c0_20, %c0_21] : memref<16x2xf32, #tpu.memory_space<vmem>>, vector<16x2xf32>
      %c0_22 = arith.constant 0 : index
      %c0_23 = arith.constant 0 : index
      %30 = vector.load %arg4[%c0_22, %c0_23] : memref<1x2xf32, #tpu.memory_space<vmem>>, vector<1x2xf32>
      %c0_24 = arith.constant 0 : index
      %c0_25 = arith.constant 0 : index
      %31 = vector.load %arg5[%c0_24, %c0_25] : memref<2x16xf32, #tpu.memory_space<vmem>>, vector<2x16xf32>
      %c0_26 = arith.constant 0 : index
      %c0_27 = arith.constant 0 : index
      %32 = vector.load %arg6[%c0_26, %c0_27] : memref<1x16xf32, #tpu.memory_space<vmem>>, vector<1x16xf32>
      %cst_28 = arith.constant dense<0.000000e+00> : vector<2x2xf32>
      %33 = tpu.matmul %27, %29, %cst_28 {dimension_numbers = #tpu.dot_dimension_numbers<[1], [0], [0], [1], [0, 0, 1, 1], [], []>} : vector<2x16xf32>, vector<16x2xf32>, vector<2x2xf32> -> vector<2x2xf32>
      %34 = vector.broadcast %30 : vector<1x2xf32> to vector<2x2xf32>
      %35 = arith.addf %33, %34 : vector<2x2xf32>
      %cst_29 = arith.constant 0.000000e+00 : f32
      %36 = vector.broadcast %cst_29 : f32 to vector<2x2xf32>
      %37 = arith.maximumf %35, %36 : vector<2x2xf32>
      %cst_30 = arith.constant dense<0.000000e+00> : vector<2x16xf32>
      %38 = tpu.matmul %37, %31, %cst_30 {dimension_numbers = #tpu.dot_dimension_numbers<[1], [0], [0], [1], [0, 0, 1, 1], [], []>} : vector<2x2xf32>, vector<2x16xf32>, vector<2x16xf32> -> vector<2x16xf32>
      %39 = vector.broadcast %32 : vector<1x16xf32> to vector<2x16xf32>
      %40 = arith.addf %38, %39 : vector<2x16xf32>
      %cst_31 = arith.constant dense<0.000000e+00> : vector<2x2xf32>
      %41 = tpu.matmul %28, %29, %cst_31 {dimension_numbers = #tpu.dot_dimension_numbers<[1], [0], [0], [1], [0, 0, 1, 1], [], []>} : vector<2x16xf32>, vector<16x2xf32>, vector<2x2xf32> -> vector<2x2xf32>
      %42 = vector.broadcast %30 : vector<1x2xf32> to vector<2x2xf32>
      %43 = arith.addf %41, %42 : vector<2x2xf32>
      %cst_32 = arith.constant 0.000000e+00 : f32
      %44 = vector.broadcast %cst_32 : f32 to vector<2x2xf32>
      %45 = arith.maximumf %43, %44 : vector<2x2xf32>
      %cst_33 = arith.constant dense<0.000000e+00> : vector<2x16xf32>
      %46 = tpu.matmul %45, %31, %cst_33 {dimension_numbers = #tpu.dot_dimension_numbers<[1], [0], [0], [1], [0, 0, 1, 1], [], []>} : vector<2x2xf32>, vector<2x16xf32>, vector<2x16xf32> -> vector<2x16xf32>
      %47 = vector.broadcast %32 : vector<1x16xf32> to vector<2x16xf32>
      %48 = arith.addf %46, %47 : vector<2x16xf32>
      %49 = arith.addf %40, %48 : vector<2x16xf32>
      %50 = arith.negf %49 : vector<2x16xf32>
      %51 = math.exp %50 : vector<2x16xf32>
      %cst_34 = arith.constant 1.000000e+00 : f32
      %52 = vector.broadcast %cst_34 : f32 to vector<2x16xf32>
      %53 = arith.addf %52, %51 : vector<2x16xf32>
      %54 = arith.divf %52, %53 : vector<2x16xf32>
      %c0_35 = arith.constant 0 : index
      %c0_36 = arith.constant 0 : index
      %55 = vector.load %arg7[%c0_35, %c0_36] : memref<2x16xf32, #tpu.memory_space<vmem>>, vector<2x16xf32>
      tpu.vector_store %arg7[%c0_35, %c0_36], %54 {strides = array<i32>} : memref<2x16xf32, #tpu.memory_space<vmem>>, vector<2x16xf32>,
    } else {
    }
    return
  }
  func.func @transform_0(%arg0: i32, %arg1: i32) -> (i32, i32, i32) {
    %c0_i32 = arith.constant 0 : i32
    %c0_i32_0 = arith.constant 0 : i32
    return %arg0, %c0_i32, %arg1 : i32, i32, i32
  }
  func.func @transform_1(%arg0: i32, %arg1: i32) -> (i32, i32) {
    %c0_i32 = arith.constant 0 : i32
    %c0_i32_0 = arith.constant 0 : i32
    %c0_i32_1 = arith.constant 0 : i32
    return %c0_i32, %c0_i32_0 : i32, i32
  }
  func.func @transform_2(%arg0: i32, %arg1: i32) -> (i32, i32) {
    %c0_i32 = arith.constant 0 : i32
    %c0_i32_0 = arith.constant 0 : i32
    %c0_i32_1 = arith.constant 0 : i32
    return %c0_i32, %c0_i32_0 : i32, i32
  }
  func.func @transform_3(%arg0: i32, %arg1: i32) -> (i32, i32) {
    %c0_i32 = arith.constant 0 : i32
    %c0_i32_0 = arith.constant 0 : i32
    %c0_i32_1 = arith.constant 0 : i32
    return %c0_i32, %c0_i32_0 : i32, i32
  }
  func.func @transform_4(%arg0: i32, %arg1: i32) -> (i32, i32) {
    %c0_i32 = arith.constant 0 : i32
    %c0_i32_0 = arith.constant 0 : i32
    %c0_i32_1 = arith.constant 0 : i32
    return %c0_i32, %c0_i32_0 : i32, i32
  }
  func.func @transform_5(%arg0: i32, %arg1: i32) -> (i32, i32) {
    %c0_i32 = arith.constant 0 : i32
    %c0_i32_0 = arith.constant 0 : i32
    return %arg0, %c0_i32 : i32, i32
  }
}

</mosaic_0001>

<bundles_post_ra>
// kernel: tpu_custom_call.1
= control target key start
LH: loop header
LB: loop body
LE: loop exit
PB: predicated region body
PF: predicated region fallthrough
CT: control target
= control target key end

     0   :  { %10 = vsyncpa [#allocation5], 0  ;;  %s734_s0 = inlined_call_operand.hbm [shape: f32[2,16,384], index: 0, kind: input, shape index: {}]   ;;  %s735_s1 = inlined_call_operand.vmem [shape: f32[16,2], index: 1, kind: input, shape index: {}]   ;;  %s736_s2 = inlined_call_operand.vmem [shape: f32[1,2], index: 2, kind: input, shape index: {}]   ;;  %s737_s3 = inlined_call_operand.vmem [shape: f32[2,16], index: 3, kind: input, shape index: {}]   ;;  %s738_s4 = inlined_call_operand.vmem [shape: f32[1,16], index: 4, kind: input, shape index: {}]   ;;  %s739_s5 = inlined_call_operand.hbm [shape: f32[2,16], index: 5, kind: output, shape index: {}]  }
   0x1   :  { %11 = vsyncpa [#allocation6], 0  ;;  %s632_s18 = smov [#allocation4]   ;;  %s584_s22 = scalar_lea.hbm %s734_s0, 1536 }
   0x2   :  { %s17_s19 = sshll.u32 %s632_s18, 4  ;;  %p585_p0 = scmp.ne.s32.totalorder %s734_s0, %s584_s22  ;;  %s18_s19 = int_to_ptr.vmem [resolvable:$true] %s17_s19 }
   0x3   :  { %p588_p1 = scmp.lt.u32.totalorder %s584_s22, %s734_s0 }
   0x5   :  { %p590_p2 = pnand %p588_p1, %p585_p0 }
   0x7   :  { %593 = shalt.err (!%p590_p2)
}
   0x8   :  { %s594_s27 = scalar_lea.vmem %s18_s19, 1536  ;;  %p599_p4 = scmp.lt.s32.totalorder %s18_s19, %s18_s19 }
   0x9   :  { %p595_p3 = scmp.ne.s32.totalorder %s18_s19, %s594_s27  ;;  %p600_p5 = scmp.lt.s32.totalorder %s594_s27, %s594_s27 }
   0xb   :  { %p601_p6 = por %p600_p5, %p599_p4 }
   0xd   :  { %p602_p7 = pnand %p601_p6, %p595_p3 }
   0xf   :  { %605 = shalt.err (!%p602_p7)
}
  0x10   :  { %s633_s28 = smov 384   ;;  %s634_s29 = smov 24  }
  0x11   :  { %23 = dma.hbm_to_vmem [thread:$0]  %s734_s0, 1536, %s18_s19, [#allocation5], %s633_s28, %s633_s28, %s634_s29  }
  0x12   :  { %628 = dma.done.wait [#allocation5], 1536  }
  0x13   :  { %629 = vsyncadd [#allocation5], 4294965760  ;;  %v54_v0 = vlaneseq  ;;  %v48_v5 = vld [vmem:[#allocation4 + $0x30] sm:$0xff]  ;;  %v49_v6 = vld [vmem:[#allocation4 + $0x38] sm:$0xff]  ;;  %vm39_vm1 = vcmask 123904   ;;  %v635_v38 = vmov 0.0  }
  0x14   :  { %v50_v7 = vld [vmem:[#allocation4 + $0x40] sm:$0xff]  ;;  %v93_v8 = vadd.f32 %v49_v6, %v48_v5  ;;  %v43_v10 = vld [vmem:[#allocation4 + $0x8] sm:$0xff]  ;;  %v44_v11 = vld [vmem:[#allocation4 + $0x10] sm:$0xff]  ;;  %v140_v33 = vmax.f32 %v48_v5, %v49_v6  ;;  %40 = vst.msk [vmem:[#allocation2] sm:$0x3] %vm39_vm1, %v635_v38  ;;  %v636_v40 = vmov -inf  }
  0x15   :  { %v55_v1 = vand.u32 127, %v54_v0  ;;  %v106_v2 = vshrl.u32 %v54_v0, 7  ;;  %v42_v9 = vld [vmem:[#allocation4] sm:$0xff]  ;;  %v51_v13 = vld [vmem:[#allocation4 + $0x48] sm:$0xff]  ;;  %v52_v14 = vld [vmem:[#allocation4 + $0x50] sm:$0xff]  ;;  %v637_v44 = vmov 0.0|0.0  }
  0x16   :  { %v85_v12 = vadd.f32 %v43_v10, %v42_v9  ;;  %v53_v15 = vld [vmem:[#allocation4 + $0x58] sm:$0xff]  ;;  %v94_v16 = vadd.f32 %v93_v8, %v50_v7  ;;  %v97_v17 = vadd.f32 %v52_v14, %v51_v13  ;;  %v46_v19 = vld [vmem:[#allocation4 + $0x20] sm:$0xff]  ;;  %v47_v20 = vld [vmem:[#allocation4 + $0x28] sm:$0xff]  ;;  %v132_v27 = vmax.f32 %v42_v9, %v43_v10  ;;  %41 = vst.msk [vmem:[#allocation3] sm:$0x3] %vm39_vm1, %v636_v40 }
  0x17   :  { %v682_v3 = vsub.s32 %v55_v1, %v106_v2  ;;  %v57_v4 = vadd.s32 256, %v55_v1  ;;  %v45_v18 = vld [vmem:[#allocation4 + $0x18] sm:$0xff]  ;;  %v144_v30 = vmax.f32 %v51_v13, %v52_v14  ;;  %v109_v37 = vadd.s32 4294967288, %v55_v1  ;;  %v181_v42 = vld [vmem:[%s735_s1 + $0x8] sm:$0xff]  ;;  %563 = vmatprep.subr.bf16.mxu0 %v637_v44  ;;  %566 = vmatprep.subr.bf16.mxu1 %v637_v44 }
  0x18   :  { %v86_v21 = vadd.f32 %v85_v12, %v44_v11  ;;  %v89_v22 = vadd.f32 %v46_v19, %v45_v18  ;;  %95 = vadd.xlane.f32.xlu1 %v94_v16  ;;  %v98_v23 = vadd.f32 %v97_v17, %v53_v15  ;;  %v136_v24 = vmax.f32 %v45_v18, %v46_v19  ;;  %v180_v41 = vld [vmem:[%s735_s1] sm:$0xff] }
  0x19   :  { %vm65_vm0 = vcmp.lt.s32.totalorder %v57_v4, 300  ;;  %v112_v39 = vsub.s32 %v109_v37, %v106_v2  ;;  %v564_v43 = vpack.c.bf16 %v181_v42, %v180_v41  ;;  %vm638_vm2 = vmmov 0  }
  0x1a   :  { %87 = vadd.xlane.f32.xlu0 %v86_v21  ;;  %v90_v25 = vadd.f32 %v89_v22, %v47_v20  ;;  %v77_v26 = vsel %vm65_vm0, %v47_v20, -inf  ;;  %v74_v28 = vsel %vm65_vm0, %v44_v11, -inf  ;;  %v83_v32 = vsel %vm65_vm0, %v53_v15, -inf  ;;  %543 = vmatprep.mubr.msk.f32.mxu0 %vm638_vm2, %v635_v38  ;;  %v520_v11 = vld [vmem:[%s736_s2] ss:$0 sm:$0xff]  ;;  %s639_s2 = smov [#allocation7]  }
  0x1b   :  { %v137_v29 = vmax.f32 %v136_v24, %v77_v26  ;;  %v133_v31 = vmax.f32 %v132_v27, %v74_v28  ;;  %v80_v34 = vsel %vm65_vm0, %v50_v7, -inf  ;;  %v145_v35 = vmax.f32 %v144_v30, %v83_v32  ;;  %565 = vmatpush3.bf16.msra.mxu0 %v564_v43  ;;  %568 = vmatpush3.bf16.msra.mxu1 %v564_v43  ;;  %v84_v54 = vld [vmem:[#allocation2] sm:$0x3]  ;;  %s511_s14 = sshll.u32 %s639_s2, 4  ;;  %s512_s14 = int_to_ptr.vmem [resolvable:$true] %s511_s14 }
  0x1c   :  { %99 = vadd.xlane.f32.xlu1 %v98_v23  ;;  %v141_v36 = vmax.f32 %v140_v33, %v80_v34  ;;  %546 = vmatprep.subr.mxu0 %v635_v38  ;;  %vm114_vm3 = vcmask 130112   ;;  %vm125_vm4 = vcmask 1041409   ;;  %vm191_vm5 = vcmask 130048   ;;  %v522_v20 = vld [vmem:[%s738_s4] ss:$0 sm:$0xff]  ;;  %s606_s15 = scalar_lea.vmem %s512_s14, 32  ;;  %p611_p9 = scmp.lt.s32.totalorder %s512_s14, %s512_s14 }
  0x1d   :  { %558 = vmatprep.subr.mxu1 %v635_v38  ;;  %555 = vmatprep.mubr.msk.f32.mxu1 %vm638_vm2, %v635_v38  ;;  %v131_v4 = vld [vmem:[#allocation3] sm:$0x3]  ;;  %vm276_vm6 = vcmask 1041408   ;;  %vm272_vm7 = vcmask 15360   ;;  %v569_v22 = vadd.f32 %v522_v20, %v522_v20  ;;  %p607_p8 = scmp.ne.s32.totalorder %s512_s14, %s606_s15  ;;  %p612_p10 = scmp.lt.s32.totalorder %s606_s15, %s606_s15 }
  0x1e   :  { %91 = vadd.xlane.f32.xlu0 %v90_v25 }
  0x1f   :  { %p613_p11 = por %p612_p10, %p611_p9 }
  0x20   :  { %138 = vmax.xlane.f32.xlu1 %v137_v29 }
  0x21   :  { %p614_p12 = pnand %p613_p11, %p607_p8 }
  0x22   :  { %134 = vmax.xlane.f32.xlu0 %v133_v31 }
  0x24   :  { %146 = vmax.xlane.f32.xlu1 %v145_v35 }
  0x26   :  { %142 = vmax.xlane.f32.xlu0 %v141_v36 }
  0xa5   :  { %v96_v45 = vpop.xlane.xlu1 %95 }
  0xa6   :  { %v119_v48 = vrot.slane %v96_v45, %v682_v3 }
  0xa7   :  { %v88_v46 = vpop.xlane.xlu0 %87 }
  0xa8   :  { %v108_v51 = vrot.slane %v88_v46, %v682_v3 }
  0xa9   :  { %v100_v47 = vpop.xlane.xlu1 %99 }
  0xaa   :  { %v123_v49 = vrot.slane %v100_v47, %v112_v39 }
  0xab   :  { %v92_v50 = vpop.xlane.xlu0 %91 }
  0xac   :  { %v113_v52 = vrot.slane %v92_v50, %v112_v39  ;;  %v124_v53 = vsel %vm114_vm3, %v123_v49, %v119_v48 }
  0xad   :  { %v139_v56 = vpop.xlane.xlu1 %138 }
  0xae   :  { %v115_v55 = vsel %vm114_vm3, %v113_v52, %v108_v51  ;;  %v159_v58 = vrot.slane %v139_v56, %v112_v39 }
  0xaf   :  { %v126_v57 = vsel %vm125_vm4, %v124_v53, %v115_v55  ;;  %v135_v59 = vpop.xlane.xlu0 %134 }
  0xb0   :  { %v128_v60 = vadd.f32 %v126_v57, %v84_v54  ;;  %v155_v61 = vrot.slane %v135_v59, %v682_v3 }
  0xb1   :  { %v147_v63 = vpop.xlane.xlu1 %146 }
  0xb2   :  { %130 = vst.msk [vmem:[#allocation2] sm:$0x3] %vm39_vm1, %v128_v60  ;;  %v160_v62 = vsel %vm114_vm3, %v159_v58, %v155_v61  ;;  %v168_v0 = vrot.slane %v147_v63, %v112_v39 }
  0xb3   :  { %v143_v1 = vpop.xlane.xlu0 %142 }
  0xb4   :  { %v164_v2 = vrot.slane %v143_v1, %v682_v3  ;;  %v183_v3 = vld [vmem:[%s737_s3] sm:$0x3] }
  0xb6   :  { %v169_v5 = vsel %vm114_vm3, %v168_v0, %v164_v2 }
  0xb7   :  { %v170_v6 = vsel %vm125_vm4, %v169_v5, %v160_v62 }
  0xb8   :  { %v172_v7 = vmax.f32 %v131_v4, %v170_v6 }
  0xb9   :  { %v177_v8 = vld [vmem:[#allocation2] sm:$0x3] }
  0xba   :  { %173 = vst.msk [vmem:[#allocation3] sm:$0x3] %vm39_vm1, %v172_v7  ;;  %v178_v9 = vmul.f32 0.0033333334, %v177_v8 }
  0xbc   :  { %544 = vmatmul.mubr.msk.f32.vlgmr.msra.gmra.mrb[0].mxu0 %vm191_vm5, %v178_v9 }
  0xbd   :  { %548 = vmatprep.mubr.msk.f32.mxu0 %vm638_vm2, %v635_v38  ;;  %547 = vmatpush3.msk.msra.mxu0 %vm276_vm6, %v183_v3 }
  0xc1   :  { %v179_v10 = vld [vmem:[#allocation3] sm:$0x3] }
  0xc2   :  { %556 = vmatmul.mubr.msk.f32.vlgmr.msra.gmra.mrb[0].mxu1 %vm191_vm5, %v179_v10 }
  0xc3   :  { %560 = vmatprep.mubr.msk.f32.mxu1 %vm638_vm2, %v635_v38  ;;  %559 = vmatpush3.msk.msra.mxu1 %vm276_vm6, %v183_v3 }
 0x18f   :  { %v261_v12 = vpop.f32.mrb[0].mxu0 }
 0x190   :  { %v262_v13 = vadd.f32 %v520_v11, %v261_v12  ;;  %v545_v14 = vpop.f32.mrb[1].mxu0 }
 0x192   :  { %v265_v15 = vmax.f32 %v262_v13, 0.0 }
 0x194   :  { %549 = vmatmul.mubr.msk.f32.vlgmr.msra.gmra.mrb[2].mxu0 %vm272_vm7, %v265_v15 }
 0x195   :  { %v419_v16 = vpop.f32.mrb[0].mxu1 }
 0x196   :  { %v420_v17 = vadd.f32 %v520_v11, %v419_v16  ;;  %v557_v18 = vpop.f32.mrb[1].mxu1 }
 0x198   :  { %v423_v19 = vmax.f32 %v420_v17, 0.0 }
 0x19a   :  { %561 = vmatmul.mubr.msk.f32.vlgmr.msra.gmra.mrb[2].mxu1 %vm272_vm7, %v423_v19 }
 0x267   :  { %v346_v21 = vpop.f32.mrb[2].mxu0 }
 0x268   :  { %v550_v23 = vpop.f32.mrb[3].mxu0  ;;  %v570_v24 = vadd.f32 %v569_v22, %v346_v21 }
 0x26d   :  { %v493_v25 = vpop.f32.mrb[2].mxu1 }
 0x26e   :  { %v571_v26 = vadd.f32 %v570_v24, %v493_v25  ;;  %v562_v27 = vpop.f32.mrb[3].mxu1 }
 0x270   :  { %v528_v28 = vmul.f32 -1.442695, %v571_v26 }
 0x272   :  { %580 = vpow2.f32 %v528_v28 }
 0x27c   :  { %v581_v29 = vpop.eup %580 }
 0x27d   :  { %v501_v30 = vadd.f32 1.0, %v581_v29 }
 0x27f   :  { %582 = vrcp.f32 %v501_v30 }
 0x289   :  { %v583_v31 = vpop.eup %582 }
 0x28a   :  { %504 = vst.msk [vmem:[#allocation7] sm:$0x3] %vm39_vm1, %v583_v31 }
 0x28b   :  { %617 = shalt.err (!%p614_p12)
}
 0x28c   :  { %s618_s17 = scalar_lea.hbm %s739_s5, 32 }
 0x28d   :  { %p619_p13 = scmp.ne.s32.totalorder %s739_s5, %s618_s17  ;;  %p622_p0 = scmp.lt.u32.totalorder %s618_s17, %s739_s5 }
 0x28f   :  { %p624_p1 = pnand %p622_p0, %p619_p13 }
 0x291   :  { %627 = shalt.err (!%p624_p1)
}
 0x292   :  { %514 = dma.vmem_to_hbm [thread:$0]  %s512_s14, 32, %s739_s5, [#allocation6]  }
 0x293   :  { %630 = dma.done.wait [#allocation6], 32  }
 0x294   :  { %631 = vsyncadd [#allocation6], 4294967264 }
 0x295   :  { %518 = vsyncpa [#allocation5], 1 }
 0x296   :  { %519 = vsyncpa [#allocation6], 1 }

</bundles_post_ra>
